<compile_context>
chip_gen: v7x
topology: tpu7x:2x2x1
jax: 0.10.0
libtpu: 0.0.40
codegen_flags: <defaults>
</compile_context>

<pallas_src>
import functools

import jax
import jax.numpy as jnp
from jax.experimental import pallas as pl
from jax.experimental.pallas import tpu as pltpu

_LANE = 128


def _round_up(v, m):
    return (v + m - 1) // m * m


def _pad_to(arr, rows, cols, dtype):
    """Zero-pad a 2-D array to (rows, cols) and cast (zeros keep math exact)."""
    r, c = arr.shape
    out = jnp.zeros((rows, cols), dtype=dtype)
    return out.at[:r, :c].set(arr.astype(dtype))


def _padded_vmem_bytes(a):
    """VMEM footprint of a 2-D resident array, including (sublane,128) padding."""
    r, c = a.shape[-2] if a.ndim >= 2 else 1, a.shape[-1]
    itemsize = jnp.dtype(a.dtype).itemsize
    sub = 8 * (4 // itemsize)          # f32 -> 8 sublanes/tile, bf16 -> 16
    return _round_up(r, sub) * _round_up(c, _LANE) * itemsize


def _pick_vmem_limit():
    """Chip-aware scoped-VMEM limit (<=48 MiB on v7x, up to 96 MiB on v5e/v6e)."""
    try:
        cap = int(pltpu.get_tpu_info().vmem_capacity_bytes)
        return max(32 * 1024 * 1024, min(cap * 3 // 4, 96 * 1024 * 1024))
    except Exception:  # pragma: no cover - conservative fallback
        return 48 * 1024 * 1024


def _make_kernel(num_mlp_layers, z_pad, tile_b, n_pad, n_points):
    n_mid = num_mlp_layers - 1          # MLP layers after the first one
    bf = jnp.bfloat16
    inv_n = 1.0 / float(n_points)

    def kernel(xy_ref, w0_ref, b0_ref, *rest):
        mid_refs = rest[:2 * n_mid]
        (wr_ref, br_ref, wh_ref, bh_ref, out_ref) = rest[2 * n_mid:]

        # ---- BatchMLP over all points of this batch tile ------------------
        xy = xy_ref[0]                                        # (rows, xy_dim) bf16
        h = (jnp.dot(xy, w0_ref[...], preferred_element_type=jnp.float32)
             + b0_ref[...])                                   # (rows, hid_pad) f32
        if n_mid > 0:
            h = jnp.maximum(h, 0.0)
        for l in range(n_mid):
            w = mid_refs[2 * l]
            b = mid_refs[2 * l + 1]
            h = (jnp.dot(h.astype(bf), w[...],
                         preferred_element_type=jnp.float32) + b[...])
            if l < n_mid - 1:                                 # no ReLU on last
                h = jnp.maximum(h, 0.0)

        # ---- per-batch mean over points: f32 reshape + reduce -------------
        h3 = h.reshape(tile_b, n_pad, h.shape[-1])            # sublane-aligned split
        if n_pad != n_points:                                 # mask padded points
            pidx = jax.lax.broadcasted_iota(jnp.int32, h3.shape, 1)
            h3 = jnp.where(pidx < n_points, h3, 0.0)
        r = jnp.sum(h3, axis=1) * inv_n                       # (tile_b, hid_pad) f32

        # ---- heads: r -> hidden -> fused [mu | pre_sigma] ------------------
        hidden = jnp.maximum(
            jnp.dot(r.astype(bf), wr_ref[...],
                    preferred_element_type=jnp.float32) + br_ref[...],
            0.0)
        full = (jnp.dot(hidden.astype(bf), wh_ref[...],
                        preferred_element_type=jnp.float32)
                + bh_ref[...])                                # (tile_b, 2*z_pad)

        # softplus(x) = max(x,0) + log1p(exp(-|x|)); applied only to sigma half
        col = jax.lax.broadcasted_iota(jnp.int32, full.shape, 1)
        sp = jnp.maximum(full, 0.0) + jnp.log1p(jnp.exp(-jnp.abs(full)))
        out_ref[0] = jnp.where(col < z_pad, full, 0.1 + 0.9 * sp)

    return kernel


def init_latent_encoder_params(key, x_dim, y_dim, z_dim, hid_dim=50, num_hid=3):
    """Deterministic parameter init (PyTorch-Linear-style uniform), f32, (in,out)."""
    def linear(key, fan_in, fan_out):
        k1, k2 = jax.random.split(key)
        bound = 1.0 / jnp.sqrt(fan_in)
        w = jax.random.uniform(k1, (fan_in, fan_out), jnp.float32, -bound, bound)
        b = jax.random.uniform(k2, (1, fan_out), jnp.float32, -bound, bound)
        return w, b

    params = {}
    in_dim = x_dim + y_dim
    dims = [in_dim] + [hid_dim] * num_hid + [hid_dim]
    mlp = []
    for i in range(len(dims) - 1):
        key, sub = jax.random.split(key)
        mlp.append(linear(sub, dims[i], dims[i + 1]))
    params["mlp"] = mlp

    key, sub = jax.random.split(key)
    params["r_to_hidden"] = linear(sub, hid_dim, hid_dim)
    key, sub = jax.random.split(key)
    params["hidden_to_mu"] = linear(sub, hid_dim, z_dim)
    key, sub = jax.random.split(key)
    params["hidden_to_pre_sigma"] = linear(sub, hid_dim, z_dim)
    return params


@functools.partial(jax.jit, static_argnames=("tile_b",))
def latent_encoder_forward(params, x, y, *, tile_b=None):
    """x: (B, N, x_dim), y: (B, N, y_dim) -> (mu, sigma) each (B, z_dim)."""
    B, N, x_dim = x.shape
    y_dim = y.shape[-1]
    xy_dim = x_dim + y_dim
    mlp = params["mlp"]
    num_mlp_layers = len(mlp)
    hid_dim = mlp[-1][0].shape[1]
    z_dim = params["hidden_to_mu"][0].shape[1]

    hid_pad = _round_up(hid_dim, _LANE)
    z_pad = _round_up(z_dim, _LANE)
    n_pad = _round_up(N, 8)              # sublane-aligned points (extras masked)

    # ---- lane-dense (zero-padded) weights: bf16 weights, f32 biases ----------
    w0, b0 = mlp[0]
    flat = [
        _pad_to(w0, xy_dim, hid_pad, jnp.bfloat16),            # fused W0 (no split)
        _pad_to(b0, 1, hid_pad, jnp.float32),
    ]
    for w, b in mlp[1:]:
        flat.append(_pad_to(w, hid_pad, hid_pad, jnp.bfloat16))
        flat.append(_pad_to(b, 1, hid_pad, jnp.float32))
    wr, br = params["r_to_hidden"]
    flat += [_pad_to(wr, hid_pad, hid_pad, jnp.bfloat16),
             _pad_to(br, 1, hid_pad, jnp.float32)]
    # fused mu|sigma head: one (hid_pad, 2*z_pad) weight, one (1, 2*z_pad) bias
    wm, bm = params["hidden_to_mu"]
    ws, bs = params["hidden_to_pre_sigma"]
    wh = jnp.zeros((hid_pad, 2 * z_pad), jnp.bfloat16)
    wh = wh.at[:hid_dim, :z_dim].set(wm.astype(jnp.bfloat16))
    wh = wh.at[:hid_dim, z_pad:z_pad + z_dim].set(ws.astype(jnp.bfloat16))
    bh = jnp.zeros((1, 2 * z_pad), jnp.float32)
    bh = bh.at[:, :z_dim].set(bm)
    bh = bh.at[:, z_pad:z_pad + z_dim].set(bs)
    flat += [wh, bh]

    # ---- VMEM-model-based batch-tile selection (all shape-static ints) -------
    vmem_limit = _pick_vmem_limit()
    if tile_b is None:
        # resident weights (x2 for possible buffering), with (sublane,128) padding
        weight_vmem = 2 * sum(_padded_vmem_bytes(a) for a in flat)
        in_per_b = n_pad * _LANE * 2 * 2          # bf16 xy block, lane-padded, 2 bufs
        out_per_b = 2 * z_pad * 4 * 2             # f32 output slab, 2 bufs
        act_per_b = n_pad * hid_pad * (2 * 4 + 2)  # two live f32 h + bf16 copy
        small_per_b = (hid_pad + 4 * z_pad) * 4   # r / hidden / head intermediates
        per_b = in_per_b + out_per_b + act_per_b + small_per_b
        budget = vmem_limit - weight_vmem - 4 * 1024 * 1024   # headroom
        tile_b = max(1, budget // per_b)
        if B >= 2:
            tile_b = min(tile_b, pl.cdiv(B, 2))   # >=2 grid tiles (v7x megacore)
        if tile_b >= 8:
            tile_b = tile_b // 8 * 8              # unmasked full-sublane stores
    tile_b = int(max(1, min(int(tile_b), B)))
    num_tiles = pl.cdiv(B, tile_b)
    b_pad = num_tiles * tile_b
    rows = tile_b * n_pad                # rows fed to the MXU per grid step

    # ---- input: single concatenated bf16 tensor, batch/point padded ----------
    xy = jnp.concatenate([x, y], axis=-1).astype(jnp.bfloat16)   # (B, N, xy_dim)
    if n_pad != N:
        xy = jnp.pad(xy, ((0, 0), (0, n_pad - N), (0, 0)))
    if b_pad != B:
        xy = jnp.pad(xy, ((0, b_pad - B), (0, 0), (0, 0)))
    xy3 = xy.reshape(num_tiles, rows, xy_dim)

    def _const_spec(a):                  # full block, resident across the grid
        nd = a.ndim
        return pl.BlockSpec(a.shape, lambda i, _n=nd: (0,) * _n)

    in_specs = ([pl.BlockSpec((1, rows, xy_dim), lambda i: (i, 0, 0))]
                + [_const_spec(a) for a in flat])
    out_spec = pl.BlockSpec((1, tile_b, 2 * z_pad), lambda i: (i, 0, 0))

    kernel = _make_kernel(num_mlp_layers, z_pad, tile_b, n_pad, N)

    out = pl.pallas_call(
        kernel,
        grid=(num_tiles,),
        out_shape=jax.ShapeDtypeStruct((num_tiles, tile_b, 2 * z_pad),
                                       jnp.float32),
        in_specs=in_specs,
        out_specs=out_spec,
        compiler_params=pltpu.CompilerParams(
            dimension_semantics=("parallel",),      # shard tiles across TCs (v7x)
            vmem_limit_bytes=int(vmem_limit)),
    )(xy3, *flat)

    out = out.reshape(b_pad, 2 * z_pad)[:B]
    mu = out[:, :z_dim]
    sigma = out[:, z_pad:z_pad + z_dim]
    return mu, sigma


def _reference_forward(params, x, y):
    """Pure-JAX reference with the same bf16-matmul / f32-accumulate numerics."""
    bf = jnp.bfloat16
    B, N, _ = x.shape
    xy = jnp.concatenate([x, y], axis=-1).astype(bf).reshape(B * N, -1)
    mlp = params["mlp"]
    w0, b0 = mlp[0]
    h = jnp.dot(xy, w0.astype(bf), preferred_element_type=jnp.float32) + b0
    for l in range(1, len(mlp)):
        h = jnp.maximum(h, 0.0)
        w, b = mlp[l]
        h = jnp.dot(h.astype(bf), w.astype(bf),
                    preferred_element_type=jnp.float32) + b
    r = jnp.mean(h.reshape(B, N, -1), axis=1)
    wr, br = params["r_to_hidden"]
    hidden = jnp.maximum(
        jnp.dot(r.astype(bf), wr.astype(bf),
                preferred_element_type=jnp.float32) + br, 0.0)
    wm, bm = params["hidden_to_mu"]
    mu = jnp.dot(hidden.astype(bf), wm.astype(bf),
                 preferred_element_type=jnp.float32) + bm
    ws, bs = params["hidden_to_pre_sigma"]
    pre = jnp.dot(hidden.astype(bf), ws.astype(bf),
                  preferred_element_type=jnp.float32) + bs
    sigma = 0.1 + 0.9 * jax.nn.softplus(pre)
    return mu, sigma


if __name__ == "__main__":
    # Small shapes consistent with the module's forward:
    #   x: (batch, num_points, x_dim), y: (batch, num_points, y_dim)
    B, N = 4, 8
    x_dim, y_dim, z_dim, hid_dim, num_hid = 3, 2, 16, 32, 3

    key = jax.random.PRNGKey(0)
    kp, kx, ky = jax.random.split(key, 3)
    params = init_latent_encoder_params(kp, x_dim, y_dim, z_dim, hid_dim, num_hid)
    x = jax.random.normal(kx, (B, N, x_dim), jnp.float32)
    y = jax.random.normal(ky, (B, N, y_dim), jnp.float32)

    # Multi-step grid: tile_b=2 -> grid=(2,)
    mu, sigma = latent_encoder_forward(params, x, y, tile_b=2)
    jax.block_until_ready((mu, sigma))

    mu_ref, sigma_ref = _reference_forward(params, x, y)
    assert mu.shape == (B, z_dim) and sigma.shape == (B, z_dim)
    assert jnp.allclose(mu, mu_ref, atol=1e-2, rtol=1e-2), "mu mismatch"
    assert jnp.allclose(sigma, sigma_ref, atol=1e-2, rtol=1e-2), "sigma mismatch"
    assert bool(jnp.all(sigma >= 0.1)), "sigma lower bound violated"

    # Batch-padding + auto tile selection path: B=3 (padded, extra row discarded)
    mu3, sigma3 = latent_encoder_forward(params, x[:3], y[:3])
    jax.block_until_ready((mu3, sigma3))
    assert jnp.allclose(mu3, mu_ref[:3], atol=1e-2, rtol=1e-2), "mu mismatch (pad)"
    assert jnp.allclose(sigma3, sigma_ref[:3], atol=1e-2, rtol=1e-2), "sigma mismatch (pad)"

    print("KERNEL_OK")
</pallas_src>

<mosaic_0001>
module attributes {stable_mosaic.version = 11 : i64} {
  func.func @kernel(%arg0: i32, %arg1: memref<1x16x5xbf16, #tpu.memory_space<vmem>>, %arg2: memref<5x128xbf16, #tpu.memory_space<vmem>>, %arg3: memref<1x128xf32, #tpu.memory_space<vmem>>, %arg4: memref<128x128xbf16, #tpu.memory_space<vmem>>, %arg5: memref<1x128xf32, #tpu.memory_space<vmem>>, %arg6: memref<128x128xbf16, #tpu.memory_space<vmem>>, %arg7: memref<1x128xf32, #tpu.memory_space<vmem>>, %arg8: memref<128x128xbf16, #tpu.memory_space<vmem>>, %arg9: memref<1x128xf32, #tpu.memory_space<vmem>>, %arg10: memref<128x128xbf16, #tpu.memory_space<vmem>>, %arg11: memref<1x128xf32, #tpu.memory_space<vmem>>, %arg12: memref<128x256xbf16, #tpu.memory_space<vmem>>, %arg13: memref<1x256xf32, #tpu.memory_space<vmem>>, %arg14: memref<1x2x256xf32, #tpu.memory_space<vmem>>) attributes {dimension_semantics = [#tpu.dimension_semantics<parallel>], iteration_bounds = array<i64: 2>, scalar_prefetch = 0 : i64, scratch_operands = 0 : i64, tpu.core_type = #tpu.core_type<tc>, window_params = [{transform_indices = @transform_0, window_bounds = array<i64: 1, 16, 5>}, {pipeline_mode = #tpu.pipeline_mode<synchronous>, transform_indices = @transform_1, window_bounds = array<i64: 5, 128>}, {pipeline_mode = #tpu.pipeline_mode<synchronous>, transform_indices = @transform_2, window_bounds = array<i64: 1, 128>}, {pipeline_mode = #tpu.pipeline_mode<synchronous>, transform_indices = @transform_3, window_bounds = array<i64: 128, 128>}, {pipeline_mode = #tpu.pipeline_mode<synchronous>, transform_indices = @transform_4, window_bounds = array<i64: 1, 128>}, {pipeline_mode = #tpu.pipeline_mode<synchronous>, transform_indices = @transform_5, window_bounds = array<i64: 128, 128>}, {pipeline_mode = #tpu.pipeline_mode<synchronous>, transform_indices = @transform_6, window_bounds = array<i64: 1, 128>}, {pipeline_mode = #tpu.pipeline_mode<synchronous>, transform_indices = @transform_7, window_bounds = array<i64: 128, 128>}, {pipeline_mode = #tpu.pipeline_mode<synchronous>, transform_indices = @transform_8, window_bounds = array<i64: 1, 128>}, {pipeline_mode = #tpu.pipeline_mode<synchronous>, transform_indices = @transform_9, window_bounds = array<i64: 128, 128>}, {pipeline_mode = #tpu.pipeline_mode<synchronous>, transform_indices = @transform_10, window_bounds = array<i64: 1, 128>}, {pipeline_mode = #tpu.pipeline_mode<synchronous>, transform_indices = @transform_11, window_bounds = array<i64: 128, 256>}, {pipeline_mode = #tpu.pipeline_mode<synchronous>, transform_indices = @transform_12, window_bounds = array<i64: 1, 256>}, {transform_indices = @transform_13, window_bounds = array<i64: 1, 2, 256>}]} {
    %c0 = arith.constant 0 : index
    %c0_0 = arith.constant 0 : index
    %c0_1 = arith.constant 0 : index
    %0 = vector.load %arg1[%c0, %c0_0, %c0_1] : memref<1x16x5xbf16, #tpu.memory_space<vmem>>, vector<1x16x5xbf16>
    %1 = vector.shape_cast %0 : vector<1x16x5xbf16> to vector<16x5xbf16>
    %c0_2 = arith.constant 0 : index
    %c0_3 = arith.constant 0 : index
    %2 = vector.load %arg2[%c0_2, %c0_3] : memref<5x128xbf16, #tpu.memory_space<vmem>>, vector<5x128xbf16>
    %cst = arith.constant dense<0.000000e+00> : vector<16x128xf32>
    %3 = tpu.matmul %1, %2, %cst {dimension_numbers = #tpu.dot_dimension_numbers<[1], [0], [0], [1], [0, 0, 1, 1], [], []>} : vector<16x5xbf16>, vector<5x128xbf16>, vector<16x128xf32> -> vector<16x128xf32>
    %c0_4 = arith.constant 0 : index
    %c0_5 = arith.constant 0 : index
    %4 = vector.load %arg3[%c0_4, %c0_5] : memref<1x128xf32, #tpu.memory_space<vmem>>, vector<1x128xf32>
    %5 = vector.broadcast %4 : vector<1x128xf32> to vector<16x128xf32>
    %6 = arith.addf %3, %5 : vector<16x128xf32>
    %cst_6 = arith.constant 0.000000e+00 : f32
    %7 = vector.broadcast %cst_6 : f32 to vector<16x128xf32>
    %8 = arith.maximumf %6, %7 : vector<16x128xf32>
    %9 = arith.truncf %8 : vector<16x128xf32> to vector<16x128xbf16>
    %c0_7 = arith.constant 0 : index
    %c0_8 = arith.constant 0 : index
    %10 = vector.load %arg4[%c0_7, %c0_8] : memref<128x128xbf16, #tpu.memory_space<vmem>>, vector<128x128xbf16>
    %cst_9 = arith.constant dense<0.000000e+00> : vector<16x128xf32>
    %11 = tpu.matmul %9, %10, %cst_9 {dimension_numbers = #tpu.dot_dimension_numbers<[1], [0], [0], [1], [0, 0, 1, 1], [], []>} : vector<16x128xbf16>, vector<128x128xbf16>, vector<16x128xf32> -> vector<16x128xf32>
    %c0_10 = arith.constant 0 : index
    %c0_11 = arith.constant 0 : index
    %12 = vector.load %arg5[%c0_10, %c0_11] : memref<1x128xf32, #tpu.memory_space<vmem>>, vector<1x128xf32>
    %13 = vector.broadcast %12 : vector<1x128xf32> to vector<16x128xf32>
    %14 = arith.addf %11, %13 : vector<16x128xf32>
    %cst_12 = arith.constant 0.000000e+00 : f32
    %15 = vector.broadcast %cst_12 : f32 to vector<16x128xf32>
    %16 = arith.maximumf %14, %15 : vector<16x128xf32>
    %17 = arith.truncf %16 : vector<16x128xf32> to vector<16x128xbf16>
    %c0_13 = arith.constant 0 : index
    %c0_14 = arith.constant 0 : index
    %18 = vector.load %arg6[%c0_13, %c0_14] : memref<128x128xbf16, #tpu.memory_space<vmem>>, vector<128x128xbf16>
    %cst_15 = arith.constant dense<0.000000e+00> : vector<16x128xf32>
    %19 = tpu.matmul %17, %18, %cst_15 {dimension_numbers = #tpu.dot_dimension_numbers<[1], [0], [0], [1], [0, 0, 1, 1], [], []>} : vector<16x128xbf16>, vector<128x128xbf16>, vector<16x128xf32> -> vector<16x128xf32>
    %c0_16 = arith.constant 0 : index
    %c0_17 = arith.constant 0 : index
    %20 = vector.load %arg7[%c0_16, %c0_17] : memref<1x128xf32, #tpu.memory_space<vmem>>, vector<1x128xf32>
    %21 = vector.broadcast %20 : vector<1x128xf32> to vector<16x128xf32>
    %22 = arith.addf %19, %21 : vector<16x128xf32>
    %cst_18 = arith.constant 0.000000e+00 : f32
    %23 = vector.broadcast %cst_18 : f32 to vector<16x128xf32>
    %24 = arith.maximumf %22, %23 : vector<16x128xf32>
    %25 = arith.truncf %24 : vector<16x128xf32> to vector<16x128xbf16>
    %c0_19 = arith.constant 0 : index
    %c0_20 = arith.constant 0 : index
    %26 = vector.load %arg8[%c0_19, %c0_20] : memref<128x128xbf16, #tpu.memory_space<vmem>>, vector<128x128xbf16>
    %cst_21 = arith.constant dense<0.000000e+00> : vector<16x128xf32>
    %27 = tpu.matmul %25, %26, %cst_21 {dimension_numbers = #tpu.dot_dimension_numbers<[1], [0], [0], [1], [0, 0, 1, 1], [], []>} : vector<16x128xbf16>, vector<128x128xbf16>, vector<16x128xf32> -> vector<16x128xf32>
    %c0_22 = arith.constant 0 : index
    %c0_23 = arith.constant 0 : index
    %28 = vector.load %arg9[%c0_22, %c0_23] : memref<1x128xf32, #tpu.memory_space<vmem>>, vector<1x128xf32>
    %29 = vector.broadcast %28 : vector<1x128xf32> to vector<16x128xf32>
    %30 = arith.addf %27, %29 : vector<16x128xf32>
    %31 = vector.shape_cast %30 : vector<16x128xf32> to vector<2x8x128xf32>
    %cst_24 = arith.constant dense<0.000000e+00> : vector<2x128xf32>
    %32 = vector.multi_reduction <add>, %31, %cst_24 [1] : vector<2x8x128xf32> to vector<2x128xf32>
    %cst_25 = arith.constant 1.250000e-01 : f32
    %33 = vector.broadcast %cst_25 : f32 to vector<2x128xf32>
    %34 = arith.mulf %32, %33 : vector<2x128xf32>
    %35 = arith.truncf %34 : vector<2x128xf32> to vector<2x128xbf16>
    %c0_26 = arith.constant 0 : index
    %c0_27 = arith.constant 0 : index
    %36 = vector.load %arg10[%c0_26, %c0_27] : memref<128x128xbf16, #tpu.memory_space<vmem>>, vector<128x128xbf16>
    %cst_28 = arith.constant dense<0.000000e+00> : vector<2x128xf32>
    %37 = tpu.matmul %35, %36, %cst_28 {dimension_numbers = #tpu.dot_dimension_numbers<[1], [0], [0], [1], [0, 0, 1, 1], [], []>} : vector<2x128xbf16>, vector<128x128xbf16>, vector<2x128xf32> -> vector<2x128xf32>
    %c0_29 = arith.constant 0 : index
    %c0_30 = arith.constant 0 : index
    %38 = vector.load %arg11[%c0_29, %c0_30] : memref<1x128xf32, #tpu.memory_space<vmem>>, vector<1x128xf32>
    %39 = vector.broadcast %38 : vector<1x128xf32> to vector<2x128xf32>
    %40 = arith.addf %37, %39 : vector<2x128xf32>
    %cst_31 = arith.constant 0.000000e+00 : f32
    %41 = vector.broadcast %cst_31 : f32 to vector<2x128xf32>
    %42 = arith.maximumf %40, %41 : vector<2x128xf32>
    %43 = arith.truncf %42 : vector<2x128xf32> to vector<2x128xbf16>
    %c0_32 = arith.constant 0 : index
    %c0_33 = arith.constant 0 : index
    %44 = vector.load %arg12[%c0_32, %c0_33] : memref<128x256xbf16, #tpu.memory_space<vmem>>, vector<128x256xbf16>
    %cst_34 = arith.constant dense<0.000000e+00> : vector<2x256xf32>
    %45 = tpu.matmul %43, %44, %cst_34 {dimension_numbers = #tpu.dot_dimension_numbers<[1], [0], [0], [1], [0, 0, 1, 1], [], []>} : vector<2x128xbf16>, vector<128x256xbf16>, vector<2x256xf32> -> vector<2x256xf32>
    %c0_35 = arith.constant 0 : index
    %c0_36 = arith.constant 0 : index
    %46 = vector.load %arg13[%c0_35, %c0_36] : memref<1x256xf32, #tpu.memory_space<vmem>>, vector<1x256xf32>
    %47 = vector.broadcast %46 : vector<1x256xf32> to vector<2x256xf32>
    %48 = arith.addf %45, %47 : vector<2x256xf32>
    %49 = tpu.iota {dimensions = array<i32: 1>} : vector<2x256xi32>
    %cst_37 = arith.constant 0.000000e+00 : f32
    %50 = vector.broadcast %cst_37 : f32 to vector<2x256xf32>
    %51 = arith.maximumf %48, %50 : vector<2x256xf32>
    %52 = math.absf %48 : vector<2x256xf32>
    %cst_38 = arith.constant 0.000000e+00 : f32
    %53 = vector.broadcast %cst_38 : f32 to vector<2x256xf32>
    %54 = arith.subf %53, %52 : vector<2x256xf32>
    %55 = math.exp %54 : vector<2x256xf32>
    %56 = math.log1p %55 : vector<2x256xf32>
    %57 = arith.addf %51, %56 : vector<2x256xf32>
    %c128_i32 = arith.constant 128 : i32
    %58 = vector.broadcast %c128_i32 : i32 to vector<2x256xi32>
    %59 = arith.cmpi slt, %49, %58 : vector<2x256xi32>
    %cst_39 = arith.constant 0.899999976 : f32
    %60 = vector.broadcast %cst_39 : f32 to vector<2x256xf32>
    %61 = arith.mulf %60, %57 : vector<2x256xf32>
    %cst_40 = arith.constant 1.000000e-01 : f32
    %62 = vector.broadcast %cst_40 : f32 to vector<2x256xf32>
    %63 = arith.addf %62, %61 : vector<2x256xf32>
    %64 = arith.select %59, %48, %63 : vector<2x256xi1>, vector<2x256xf32>
    %c0_41 = arith.constant 0 : index
    %c0_42 = arith.constant 0 : index
    %c0_43 = arith.constant 0 : index
    %65 = vector.load %arg14[%c0_41, %c0_42, %c0_43] : memref<1x2x256xf32, #tpu.memory_space<vmem>>, vector<1x2x256xf32>
    %66 = vector.shape_cast %65 : vector<1x2x256xf32> to vector<2x256xf32>
    %67 = vector.shape_cast %64 : vector<2x256xf32> to vector<1x2x256xf32>
    tpu.vector_store %arg14[%c0_41, %c0_42, %c0_43], %67 {strides = array<i32>} : memref<1x2x256xf32, #tpu.memory_space<vmem>>, vector<1x2x256xf32>,
    return
  }
  func.func @transform_0(%arg0: i32) -> (i32, i32, i32) {
    %c0_i32 = arith.constant 0 : i32
    %c0_i32_0 = arith.constant 0 : i32
    %c0_i32_1 = arith.constant 0 : i32
    return %arg0, %c0_i32, %c0_i32_0 : i32, i32, i32
  }
  func.func @transform_1(%arg0: i32) -> (i32, i32) {
    %c0_i32 = arith.constant 0 : i32
    %c0_i32_0 = arith.constant 0 : i32
    %c0_i32_1 = arith.constant 0 : i32
    return %c0_i32, %c0_i32_0 : i32, i32
  }
  func.func @transform_2(%arg0: i32) -> (i32, i32) {
    %c0_i32 = arith.constant 0 : i32
    %c0_i32_0 = arith.constant 0 : i32
    %c0_i32_1 = arith.constant 0 : i32
    return %c0_i32, %c0_i32_0 : i32, i32
  }
  func.func @transform_3(%arg0: i32) -> (i32, i32) {
    %c0_i32 = arith.constant 0 : i32
    %c0_i32_0 = arith.constant 0 : i32
    %c0_i32_1 = arith.constant 0 : i32
    return %c0_i32, %c0_i32_0 : i32, i32
  }
  func.func @transform_4(%arg0: i32) -> (i32, i32) {
    %c0_i32 = arith.constant 0 : i32
    %c0_i32_0 = arith.constant 0 : i32
    %c0_i32_1 = arith.constant 0 : i32
    return %c0_i32, %c0_i32_0 : i32, i32
  }
  func.func @transform_5(%arg0: i32) -> (i32, i32) {
    %c0_i32 = arith.constant 0 : i32
    %c0_i32_0 = arith.constant 0 : i32
    %c0_i32_1 = arith.constant 0 : i32
    return %c0_i32, %c0_i32_0 : i32, i32
  }
  func.func @transform_6(%arg0: i32) -> (i32, i32) {
    %c0_i32 = arith.constant 0 : i32
    %c0_i32_0 = arith.constant 0 : i32
    %c0_i32_1 = arith.constant 0 : i32
    return %c0_i32, %c0_i32_0 : i32, i32
  }
  func.func @transform_7(%arg0: i32) -> (i32, i32) {
    %c0_i32 = arith.constant 0 : i32
    %c0_i32_0 = arith.constant 0 : i32
    %c0_i32_1 = arith.constant 0 : i32
    return %c0_i32, %c0_i32_0 : i32, i32
  }
  func.func @transform_8(%arg0: i32) -> (i32, i32) {
    %c0_i32 = arith.constant 0 : i32
    %c0_i32_0 = arith.constant 0 : i32
    %c0_i32_1 = arith.constant 0 : i32
    return %c0_i32, %c0_i32_0 : i32, i32
  }
  func.func @transform_9(%arg0: i32) -> (i32, i32) {
    %c0_i32 = arith.constant 0 : i32
    %c0_i32_0 = arith.constant 0 : i32
    %c0_i32_1 = arith.constant 0 : i32
    return %c0_i32, %c0_i32_0 : i32, i32
  }
  func.func @transform_10(%arg0: i32) -> (i32, i32) {
    %c0_i32 = arith.constant 0 : i32
    %c0_i32_0 = arith.constant 0 : i32
    %c0_i32_1 = arith.constant 0 : i32
    return %c0_i32, %c0_i32_0 : i32, i32
  }
  func.func @transform_11(%arg0: i32) -> (i32, i32) {
    %c0_i32 = arith.constant 0 : i32
    %c0_i32_0 = arith.constant 0 : i32
    %c0_i32_1 = arith.constant 0 : i32
    return %c0_i32, %c0_i32_0 : i32, i32
  }
  func.func @transform_12(%arg0: i32) -> (i32, i32) {
    %c0_i32 = arith.constant 0 : i32
    %c0_i32_0 = arith.constant 0 : i32
    %c0_i32_1 = arith.constant 0 : i32
    return %c0_i32, %c0_i32_0 : i32, i32
  }
  func.func @transform_13(%arg0: i32) -> (i32, i32, i32) {
    %c0_i32 = arith.constant 0 : i32
    %c0_i32_0 = arith.constant 0 : i32
    %c0_i32_1 = arith.constant 0 : i32
    return %arg0, %c0_i32, %c0_i32_0 : i32, i32, i32
  }
}

</mosaic_0001>

<bundles_post_ra>
// kernel: latent_encoder_forward.1
= control target key start
LH: loop header
LB: loop body
LE: loop exit
PB: predicated region body
PF: predicated region fallthrough
CT: control target
= control target key end

     0   :  { %s1596_s25 = smov 0   ;;  %s1825_s0 = inlined_call_operand.vmem [shape: bf16[2,16,5], index: 0, kind: input, shape index: {}]   ;;  %s1826_s1 = inlined_call_operand.vmem [shape: bf16[5,128], index: 1, kind: input, shape index: {}]   ;;  %s1827_s2 = inlined_call_operand.vmem [shape: f32[1,128], index: 2, kind: input, shape index: {}]   ;;  %s1828_s3 = inlined_call_operand.vmem [shape: bf16[128,128], index: 3, kind: input, shape index: {}]   ;;  %s1829_s4 = inlined_call_operand.vmem [shape: f32[1,128], index: 4, kind: input, shape index: {}]   ;;  %s1830_s5 = inlined_call_operand.vmem [shape: bf16[128,128], index: 5, kind: input, shape index: {}]   ;;  %s1831_s6 = inlined_call_operand.vmem [shape: f32[1,128], index: 6, kind: input, shape index: {}]   ;;  %s1832_s7 = inlined_call_operand.vmem [shape: bf16[128,128], index: 7, kind: input, shape index: {}]   ;;  %s1833_s8 = inlined_call_operand.vmem [shape: f32[1,128], index: 8, kind: input, shape index: {}]   ;;  %s1834_s9 = inlined_call_operand.vmem [shape: bf16[128,128], index: 9, kind: input, shape index: {}]   ;;  %s1835_s10 = inlined_call_operand.vmem [shape: f32[1,128], index: 10, kind: input, shape index: {}]   ;;  %s1836_s11 = inlined_call_operand.vmem [shape: bf16[128,256], index: 11, kind: input, shape index: {}]   ;;  %s1837_s12 = inlined_call_operand.vmem [shape: f32[1,256], index: 12, kind: input, shape index: {}]   ;;  %s1838_s13 = inlined_call_operand.vmem [shape: f32[2,2,256], index: 13, kind: output, shape index: {}]  }
   0x1 LB: > { %s1248_s26 = sadd.s32 4294967295, %s1520_s25   ;;  %p1252_p0 = scmp.ge.s32.totalorder %s1520_s25, 1  ;;  %s1520_s25 = sphi %s1596_s25, %s23_s25  }
   0x2   : > { %p387_p1 = scmp.lt.s32.totalorder %s1520_s25, 3 }
   0x4   : > { %p388_p2 = pnand %p1252_p0, %p387_p1 }
   0x5   : > { %v444_v0 = vld [vmem:[%s1826_s1] sm:$0x7] (!%p388_p2)  ;;  %vm461_vm0 = vcmask (!%p388_p2), 1041408   ;;  %vm462_vm1 = vcmask (!%p388_p2), 1042432   ;;  %v1522_v1 = vmov (!%p388_p2), 0.0   ;;  %v1523_v2 = vmov (!%p388_p2), 65535  }
   0x6   : > { %391 = sbr.rel (%p388_p2) target bundleno = 1389 (0x56d), region = 72  ;;  %1355 = vmatprep.subr.bf16.mxu0 (!%p388_p2), %v1522_v1  ;;  %v463_v3 = vsel (!%p388_p2), %vm461_vm0, 4294967295, %v1523_v2  ;;  %p431_p3 = scmp.lt.s32.totalorder (!%p388_p2), %s1248_s26, 1  ;;  %1361 = vmatprep.subr.bf16.mxu1 (!%p388_p2), %v1522_v1  ;;  %vm1524_vm2 = vmmov (!%p388_p2), 0   ;;  %v1454_v5 = vld [vmem:[%s1828_s3] sm:$0xff] (!%p388_p2)   ;;  %v1455_v7 = vld [vmem:[%s1828_s3 + $0x8] sm:$0xff] (!%p388_p2)  }
   0x7   : > { %v464_v4 = vsel (!%p388_p2), %vm462_vm1, %v463_v3, 0  ;;  %1357 = vmatprep.mubr.msk.bf16.mxu0 (!%p388_p2), %vm1524_vm2, %v1522_v1  ;;  %1377 = vmatprep.mubr.msk.bf16.mxu1 (!%p388_p2), %vm1524_vm2, %v1522_v1  ;;  %vm457_vm3 = vcmask (!%p388_p2), 39936   ;;  %v1456_v9 = vld [vmem:[%s1828_s3 + $0x10] sm:$0xff] (!%p388_p2)   ;;  %v1457_v10 = vld [vmem:[%s1828_s3 + $0x18] sm:$0xff] (!%p388_p2)   ;;  %v1458_v11 = vld [vmem:[%s1828_s3 + $0x20] sm:$0xff] (!%p388_p2)   ;;  %vm897_vm4 = vcmask (!%p388_p2), 1041409  }
   0x8   : > { %v466_v6 = vand.u32 (!%p388_p2), %v464_v4, %v444_v0  ;;  %1362 = vmatpush3.bf16.msra.mxu1 (!%p388_p2), %v1454_v5  ;;  %v1459_v12 = vld [vmem:[%s1828_s3 + $0x28] sm:$0xff] (!%p388_p2)   ;;  %v1460_v13 = vld [vmem:[%s1828_s3 + $0x30] sm:$0xff] (!%p388_p2)   ;;  %v1461_v14 = vld [vmem:[%s1828_s3 + $0x38] sm:$0xff] (!%p388_p2)  }
   0x9   : > { %1363 = vmatprep.subr.bf16.mxu1 (!%p388_p2), %v1522_v1  ;;  %v1462_v15 = vld [vmem:[%s1830_s5] sm:$0xff] (!%p388_p2)   ;;  %v1463_v16 = vld [vmem:[%s1830_s5 + $0x8] sm:$0xff] (!%p388_p2)   ;;  %v1464_v17 = vld [vmem:[%s1830_s5 + $0x10] sm:$0xff] (!%p388_p2)  }
   0xa   : > { %1356 = vmatpush3.bf16.msra.mxu0 (!%p388_p2), %v466_v6  ;;  %v1465_v18 = vld [vmem:[%s1830_s5 + $0x18] sm:$0xff] (!%p388_p2)   ;;  %v1466_v19 = vld [vmem:[%s1830_s5 + $0x20] sm:$0xff] (!%p388_p2)   ;;  %v1467_v20 = vld [vmem:[%s1830_s5 + $0x28] sm:$0xff] (!%p388_p2)  }
   0xb   : > { %1381 = vmatprep.subr.bf16.mxu0 (!%p388_p2), %v1522_v1  ;;  %v1257_v21 = vld [vmem:[%s1827_s2] ss:$0 sm:$0xff] (!%p388_p2)  ;;  %v1468_v31 = vld [vmem:[%s1830_s5 + $0x30] sm:$0xff] (!%p388_p2)   ;;  %v1469_v32 = vld [vmem:[%s1830_s5 + $0x38] sm:$0xff] (!%p388_p2)  }
   0xc   : > { %1364 = vmatpush3.bf16.msra.mxu1 (!%p388_p2), %v1455_v7  ;;  %v1470_v33 = vld [vmem:[%s1832_s7] sm:$0xff] (!%p388_p2)   ;;  %v1471_v34 = vld [vmem:[%s1832_s7 + $0x8] sm:$0xff] (!%p388_p2)   ;;  %v1472_v35 = vld [vmem:[%s1832_s7 + $0x10] sm:$0xff] (!%p388_p2)  }
   0xd   : > { %s1840_s26 = smov (!%p431_p3, %s1248_s26), 1  ;;  %1365 = vmatprep.subr.bf16.mxu1 %v1522_v1  ;;  %v1473_v36 = vld [vmem:[%s1832_s7 + $0x18] sm:$0xff]   ;;  %v1474_v37 = vld [vmem:[%s1832_s7 + $0x20] sm:$0xff]   ;;  %v1475_v38 = vld [vmem:[%s1832_s7 + $0x28] sm:$0xff]  }
   0xe   : > { %s1315_s16 = sshll.u32 %s1840_s26, 3  ;;  %v1260_v39 = vld [vmem:[%s1829_s4] ss:$0 sm:$0xff]  ;;  %v1476_v49 = vld [vmem:[%s1832_s7 + $0x30] sm:$0xff]   ;;  %v1477_v50 = vld [vmem:[%s1832_s7 + $0x38] sm:$0xff]  }
   0xf   : > { %s435_s19 = scalar_lea.vmem %s1825_s0, %s1315_s16  ;;  %v1478_v51 = vld [vmem:[%s1834_s9] sm:$0xff]   ;;  %v1479_v52 = vld [vmem:[%s1834_s9 + $0x8] sm:$0xff]   ;;  %v1480_v63 = vld [vmem:[%s1834_s9 + $0x10] sm:$0xff]  }
  0x10   : > { %v1453_v8 = vld [vmem:[%s435_s19] sm:$0xff]   ;;  %1366 = vmatpush3.bf16.msra.mxu1 %v1456_v9  ;;  %v1481_v0 = vld [vmem:[%s1834_s9 + $0x18] sm:$0xff]   ;;  %v1483_v3 = vld [vmem:[%s1834_s9 + $0x28] sm:$0xff]   ;;  %s1316_s19 = sshll.u32 %s1840_s26, 2 }
  0x11   : > { %1358 = vmatmul.mubr.msk.bf16.vlgmr.msra.gmra.mrb[0].mxu0 %vm457_vm3, %v1453_v8  ;;  %1367 = vmatprep.subr.bf16.mxu1 %v1522_v1  ;;  %v1269_v53 = vld [vmem:[%s1831_s6] ss:$0 sm:$0xff]  ;;  %v1484_v4 = vld [vmem:[%s1834_s9 + $0x30] sm:$0xff]   ;;  %v1485_v5 = vld [vmem:[%s1834_s9 + $0x38] sm:$0xff]   ;;  %s440_s22 = scalar_lea.vmem %s1838_s13, %s1316_s19 }
  0x12   : > { %1397 = vmatprep.mubr.msk.bf16.mxu0 %vm1524_vm2, %v1522_v1  ;;  %1382 = vmatpush3.bf16.msra.mxu0 %v1462_v15  ;;  %v1482_v2 = vld [vmem:[%s1834_s9 + $0x20] sm:$0xff]   ;;  %v1491_v8 = vld [vmem:[%s1836_s11 + $0x14] ss:$8 sps:$4 sm:$0xff]  }
  0x13   : > { %1383 = vmatprep.subr.bf16.mxu0 %v1522_v1  ;;  %v1486_v6 = vld [vmem:[%s1836_s11] ss:$8 sps:$4 sm:$0xff]   ;;  %v1488_v7 = vld [vmem:[%s1836_s11 + $0x4] ss:$8 sps:$4 sm:$0xff]   ;;  %v1503_v15 = vld [vmem:[%s1836_s11 + $0x54] ss:$8 sps:$4 sm:$0xff]  }
  0x14   : > { %1368 = vmatpush3.bf16.msra.mxu1 %v1457_v10  ;;  %v1494_v9 = vld [vmem:[%s1836_s11 + $0x24] ss:$8 sps:$4 sm:$0xff]   ;;  %v1492_v10 = vld [vmem:[%s1836_s11 + $0x20] ss:$8 sps:$4 sm:$0xff]  }
  0x15   : > { %1369 = vmatprep.subr.bf16.mxu1 %v1522_v1 }
  0x16   : > { %1384 = vmatpush3.bf16.msra.mxu0 %v1463_v16  ;;  %v1501_v16 = vld [vmem:[%s1836_s11 + $0x50] ss:$8 sps:$4 sm:$0xff]  }
  0x17   : > { %1385 = vmatprep.subr.bf16.mxu0 %v1522_v1 }
  0x18   : > { %1370 = vmatpush3.bf16.msra.mxu1 %v1458_v11  ;;  %v1497_v11 = vld [vmem:[%s1836_s11 + $0x34] ss:$8 sps:$4 sm:$0xff]  }
  0x19   : > { %1371 = vmatprep.subr.bf16.mxu1 %v1522_v1 }
  0x1a   : > { %1386 = vmatpush3.bf16.msra.mxu0 %v1464_v17  ;;  %v1506_v17 = vld [vmem:[%s1836_s11 + $0x64] ss:$8 sps:$4 sm:$0xff]  }
  0x1b   : > { %1387 = vmatprep.subr.bf16.mxu0 %v1522_v1 }
  0x1c   : > { %1372 = vmatpush3.bf16.msra.mxu1 %v1459_v12  ;;  %v1495_v12 = vld [vmem:[%s1836_s11 + $0x30] ss:$8 sps:$4 sm:$0xff]  }
  0x1d   : > { %1373 = vmatprep.subr.bf16.mxu1 %v1522_v1 }
  0x1e   : > { %1388 = vmatpush3.bf16.msra.mxu0 %v1465_v18  ;;  %v1504_v18 = vld [vmem:[%s1836_s11 + $0x60] ss:$8 sps:$4 sm:$0xff]  }
  0x1f   : > { %1389 = vmatprep.subr.bf16.mxu0 %v1522_v1 }
  0x20   : > { %1374 = vmatpush3.bf16.msra.mxu1 %v1460_v13  ;;  %v1500_v13 = vld [vmem:[%s1836_s11 + $0x44] ss:$8 sps:$4 sm:$0xff]  }
  0x21   : > { %1375 = vmatprep.subr.bf16.mxu1 %v1522_v1 }
  0x22   : > { %1390 = vmatpush3.bf16.msra.mxu0 %v1466_v19  ;;  %v1278_v19 = vld [vmem:[%s1833_s8] ss:$0 sm:$0xff] }
  0x23   : > { %1391 = vmatprep.subr.bf16.mxu0 %v1522_v1 }
  0x24   : > { %1376 = vmatpush3.bf16.msra.mxu1 %v1461_v14  ;;  %v1498_v14 = vld [vmem:[%s1836_s11 + $0x40] ss:$8 sps:$4 sm:$0xff]  }
  0x25   : > { %1401 = vmatprep.subr.bf16.mxu1 %v1522_v1 }
  0x26   : > { %1392 = vmatpush3.bf16.msra.mxu0 %v1467_v20 }
  0x27   : > { %1393 = vmatprep.subr.bf16.mxu0 %v1522_v1 }
  0x2a   : > { %1394 = vmatpush3.bf16.msra.mxu0 %v1468_v31 }
  0x2b   : > { %1395 = vmatprep.subr.bf16.mxu0 %v1522_v1 }
  0x2e   : > { %1396 = vmatpush3.bf16.msra.mxu0 %v1469_v32 }
  0x2f   : > { %1421 = vmatprep.subr.bf16.mxu0 %v1522_v1 }
  0xe4   : > { %v502_v22 = vpop.f32.mrb[0].mxu0 }
  0xe5   : > { %v503_v23 = vadd.f32 %v1257_v21, %v502_v22  ;;  %v1359_v24 = vpop.f32.mrb[1].mxu0 }
  0xe6   : > { %v505_v25 = vpop.f32.mrb[2].mxu0 }
  0xe7   : > { %v506_v26 = vadd.f32 %v1257_v21, %v505_v25  ;;  %v1360_v27 = vpop.f32.mrb[3].mxu0  ;;  %v509_v28 = vmax.f32 %v503_v23, 0.0 }
  0xe9   : > { %v510_v29 = vmax.f32 %v506_v26, 0.0 }
  0xeb   : > { %v511_v30 = vpack.c.bf16 %v510_v29, %v509_v28 }
  0xed   : > { %1378 = vmatmul.mubr.bf16.vlgmr.msra.gmra.mrb[0].mxu1 %v511_v30 }
  0xee   : > { %1417 = vmatprep.mubr.msk.bf16.mxu1 %vm1524_vm2, %v1522_v1  ;;  %1402 = vmatpush3.bf16.msra.mxu1 %v1470_v33 }
  0xef   : > { %1403 = vmatprep.subr.bf16.mxu1 %v1522_v1 }
  0xf2   : > { %1404 = vmatpush3.bf16.msra.mxu1 %v1471_v34 }
  0xf3   : > { %1405 = vmatprep.subr.bf16.mxu1 %v1522_v1 }
  0xf6   : > { %1406 = vmatpush3.bf16.msra.mxu1 %v1472_v35 }
  0xf7   : > { %1407 = vmatprep.subr.bf16.mxu1 %v1522_v1 }
  0xfa   : > { %1408 = vmatpush3.bf16.msra.mxu1 %v1473_v36 }
  0xfb   : > { %1409 = vmatprep.subr.bf16.mxu1 %v1522_v1 }
  0xfe   : > { %1410 = vmatpush3.bf16.msra.mxu1 %v1474_v37 }
  0xff   : > { %1411 = vmatprep.subr.bf16.mxu1 %v1522_v1 }
 0x102   : > { %1412 = vmatpush3.bf16.msra.mxu1 %v1475_v38 }
 0x103   : > { %1413 = vmatprep.subr.bf16.mxu1 %v1522_v1 }
 0x106   : > { %1414 = vmatpush3.bf16.msra.mxu1 %v1476_v49  ;;  %v1287_v49 = vld [vmem:[%s1835_s10] ss:$0 sm:$0xff] }
 0x107   : > { %1415 = vmatprep.subr.bf16.mxu1 %v1522_v1 }
 0x10a   : > { %1416 = vmatpush3.bf16.msra.mxu1 %v1477_v50 }
 0x10b   : > { %1099 = vmatprep.subr.bf16.mxu1 %v1488_v7 }
 0x1c0   : > { %v617_v40 = vpop.f32.mrb[0].mxu1 }
 0x1c1   : > { %v618_v41 = vadd.f32 %v1260_v39, %v617_v40  ;;  %v1379_v42 = vpop.f32.mrb[1].mxu1 }
 0x1c2   : > { %v620_v43 = vpop.f32.mrb[2].mxu1 }
 0x1c3   : > { %v621_v44 = vadd.f32 %v1260_v39, %v620_v43  ;;  %v1380_v45 = vpop.f32.mrb[3].mxu1  ;;  %v624_v46 = vmax.f32 %v618_v41, 0.0 }
 0x1c5   : > { %v625_v47 = vmax.f32 %v621_v44, 0.0 }
 0x1c7   : > { %v626_v48 = vpack.c.bf16 %v625_v47, %v624_v46  ;;  %v1509_v46 = vld [vmem:[%s1836_s11 + $0x74] ss:$8 sps:$4 sm:$0xff]   ;;  %v1507_v47 = vld [vmem:[%s1836_s11 + $0x70] ss:$8 sps:$4 sm:$0xff]  }
 0x1c9   : > { %1398 = vmatmul.mubr.bf16.vlgmr.msra.gmra.mrb[4].mxu0 %v626_v48  ;;  %v1525_v48 = vmov 0  }
 0x1ca   : > { %1437 = vmatprep.mubr.msk.bf16.mxu0 %vm1524_vm2, %v1522_v1  ;;  %1422 = vmatpush3.bf16.msra.mxu0 %v1478_v51 }
 0x1cb   : > { %1423 = vmatprep.subr.bf16.mxu0 %v1522_v1 }
 0x1ce   : > { %1424 = vmatpush3.bf16.msra.mxu0 %v1479_v52 }
 0x1cf   : > { %1425 = vmatprep.subr.bf16.mxu0 %v1522_v1 }
 0x1d2   : > { %1426 = vmatpush3.bf16.msra.mxu0 %v1480_v63 }
 0x1d3   : > { %1427 = vmatprep.subr.bf16.mxu0 %v1522_v1 }
 0x1d6   : > { %1428 = vmatpush3.bf16.msra.mxu0 %v1481_v0 }
 0x1d7   : > { %1429 = vmatprep.subr.bf16.mxu0 %v1522_v1 }
 0x1da   : > { %1430 = vmatpush3.bf16.msra.mxu0 %v1482_v2 }
 0x1db   : > { %1431 = vmatprep.subr.bf16.mxu0 %v1522_v1 }
 0x1de   : > { %1432 = vmatpush3.bf16.msra.mxu0 %v1483_v3 }
 0x1df   : > { %1433 = vmatprep.subr.bf16.mxu0 %v1522_v1 }
 0x1e2   : > { %1434 = vmatpush3.bf16.msra.mxu0 %v1484_v4 }
 0x1e3   : > { %1435 = vmatprep.subr.bf16.mxu0 %v1522_v1  ;;  %v1489_v1 = vld [vmem:[%s1836_s11 + $0x10] ss:$8 sps:$4 sm:$0xff]  }
 0x1e6   : > { %1436 = vmatpush3.bf16.msra.mxu0 %v1485_v5 }
 0x29c   : > { %v732_v54 = vpop.f32.mrb[4].mxu0 }
 0x29d   : > { %v733_v55 = vadd.f32 %v1269_v53, %v732_v54  ;;  %v1399_v56 = vpop.f32.mrb[5].mxu0 }
 0x29e   : > { %v735_v57 = vpop.f32.mrb[6].mxu0 }
 0x29f   : > { %v736_v58 = vadd.f32 %v1269_v53, %v735_v57  ;;  %v1400_v59 = vpop.f32.mrb[7].mxu0  ;;  %v739_v60 = vmax.f32 %v733_v55, 0.0  ;;  %v1009_v57 = vlaneseq }
 0x2a1   : > { %v740_v61 = vmax.f32 %v736_v58, 0.0  ;;  %v1010_v58 = vshrl.u32 %v1009_v57, 7 }
 0x2a3   : > { %v741_v62 = vpack.c.bf16 %v740_v61, %v739_v60  ;;  %v1015_v59 = vsub.s32 1, %v1010_v58  ;;  %v1007_v60 = vld [vmem:[%s1837_s12] sm:$0x3] }
 0x2a5   : > { %1418 = vmatmul.mubr.bf16.vlgmr.msra.gmra.mrb[4].mxu1 %v741_v62  ;;  %v1016_v61 = vrot.slane %v1007_v60, %v1015_v59 }
 0x2a6   : > { %1100 = vmatpush1.bf16.msra.mxu1 %v1486_v6  ;;  %1131 = vmatprep.mubr.bf16.mxu1 %v1525_v48 }
 0x2a7   : > { %1101 = vmatprep.subr.bf16.mxu1 %v1491_v8 }
 0x2aa   : > { %1102 = vmatpush1.bf16.msra.mxu1 %v1489_v1 }
 0x2ab   : > { %1103 = vmatprep.subr.bf16.mxu1 %v1494_v9 }
 0x2ae   : > { %1104 = vmatpush1.bf16.msra.mxu1 %v1492_v10 }
 0x2af   : > { %1105 = vmatprep.subr.bf16.mxu1 %v1497_v11 }
 0x2b2   : > { %1106 = vmatpush1.bf16.msra.mxu1 %v1495_v12  ;;  %v1011_v12 = vsub.s32 0, %v1010_v58 }
 0x2b3   : > { %1107 = vmatprep.subr.bf16.mxu1 %v1500_v13 }
 0x2b6   : > { %1108 = vmatpush1.bf16.msra.mxu1 %v1498_v14 }
 0x2b7   : > { %1109 = vmatprep.subr.bf16.mxu1 %v1503_v15 }
 0x2ba   : > { %1110 = vmatpush1.bf16.msra.mxu1 %v1501_v16 }
 0x2bb   : > { %1111 = vmatprep.subr.bf16.mxu1 %v1506_v17  ;;  %v1012_v17 = vrot.slane %v1007_v60, %v1011_v12 }
 0x2be   : > { %1112 = vmatpush1.bf16.msra.mxu1 %v1504_v18 }
 0x2bf   : > { %1113 = vmatprep.subr.bf16.mxu1 %v1509_v46 }
 0x2c2   : > { %1114 = vmatpush1.bf16.msra.mxu1 %v1507_v47 }
 0x378   : > { %v847_v20 = vpop.f32.mrb[4].mxu1 }
 0x379   : > { %v848_v21 = vadd.f32 %v1278_v19, %v847_v20  ;;  %v1419_v22 = vpop.f32.mrb[5].mxu1 }
 0x37a   : > { %v850_v23 = vpop.f32.mrb[6].mxu1 }
 0x37b   : > { %v854_v24 = vrot.slane %v848_v21, 4  ;;  %v851_v25 = vadd.f32 %v1278_v19, %v850_v23  ;;  %v1420_v26 = vpop.f32.mrb[7].mxu1 }
 0x37d   : > { %v855_v27 = vadd.f32 %v854_v24, %v848_v21  ;;  %v860_v28 = vrot.slane %v851_v25, 4 }
 0x37f   : > { %v856_v29 = vrot.slane %v855_v27, 2  ;;  %v861_v30 = vadd.f32 %v860_v28, %v851_v25 }
 0x381   : > { %v857_v31 = vadd.f32 %v856_v29, %v855_v27  ;;  %v862_v32 = vrot.slane %v861_v30, 2 }
 0x383   : > { %v858_v33 = vrot.slane %v857_v31, 1  ;;  %v863_v34 = vadd.f32 %v862_v32, %v861_v30 }
 0x385   : > { %v859_v35 = vadd.f32 %v858_v33, %v857_v31  ;;  %v864_v36 = vrot.slane %v863_v34, 1 }
 0x387   : > { %v866_v37 = vmul.f32 0.125, %v859_v35  ;;  %v865_v38 = vadd.f32 %v864_v36, %v863_v34 }
 0x389   : > { %v868_v39 = vpack.c.bf16 %v866_v37, %v866_v37  ;;  %v867_v40 = vmul.f32 0.125, %v865_v38 }
 0x38b   : > { %v869_v41 = vpack.c.bf16 %v867_v40, %v867_v40  ;;  %v895_v42 = vunpack.c.l.b16 %v868_v39 }
 0x38d   : > { %v896_v43 = vunpack.c.l.b16 %v869_v41 }
 0x38f   : > { %v898_v44 = vsel %vm897_vm4, %v896_v43, %v895_v42 }
 0x390   : > { %v899_v45 = vpack.c.b16 %v898_v44, %v898_v44 }
 0x392   : > { %1438 = vmatmul.mubr.bf16.vlgmr.msra.gmra.mrb[8].mxu0 %v899_v45 }
 0x465   : > { %v983_v50 = vpop.f32.mrb[8].mxu0 }
 0x466   : > { %v984_v51 = vadd.f32 %v1287_v49, %v983_v50  ;;  %v1439_v52 = vpop.f32.mrb[9].mxu0 }
 0x467   : > { %v986_v53 = vpop.f32.mrb[10].mxu0 }
 0x468   : > { %v989_v54 = vmax.f32 %v984_v51, 0.0  ;;  %v1440_v55 = vpop.f32.mrb[11].mxu0 }
 0x46a   : > { %v990_v56 = vpack.c.bf16 %v989_v54, %v989_v54 }
 0x46c   : > { %1132 = vmatmul.mubr.bf16.vlgmr.msra.gmra.mrb[8].mxu1 %v990_v56 }
 0x53f   : > { %v1133_v62 = vpop.f32.mrb[8].mxu1 }
 0x540   : > { %v1135_v63 = vpop.f32.mrb[9].mxu1  ;;  %v1134_v20 = vadd.f32 %v1133_v62, %v1012_v17 }
 0x541   : > { %v1136_v0 = vadd.f32 %v1135_v63, %v1016_v61  ;;  %v1137_v2 = vpop.f32.mrb[10].mxu1 }
 0x542   : > { %v1138_v3 = vpop.f32.mrb[11].mxu1 }
 0x543   : > { %v1146_v4 = vand.u32 2147483647, %v1136_v0  ;;  %v1144_v15 = vmax.f32 %v1136_v0, 0.0 }
 0x545   : > { %v1148_v5 = vsub.f32 0.0, %v1146_v4 }
 0x547   : > { %v1151_v6 = vmul.f32 1.442695, %v1148_v5 }
 0x549   : > { %1510 = vpow2.f32 %v1151_v6 }
 0x553   : > { %v1511_v7 = vpop.eup %1510 }
 0x554   : > { %v1162_v8 = vadd.f32 1.0, %v1511_v7  ;;  %v1165_v1 = vmul.f32 -0.5, %v1511_v7  ;;  %v1168_v10 = vand.u32 2147483647, %v1511_v7 }
 0x556   : > { %1512 = vlog2.f32 %v1162_v8  ;;  %v1166_v9 = vadd.f32 1.0, %v1165_v1  ;;  %vm1169_vm5 = vcmp.lt.f32.partialorder %v1168_v10, 0.0004427343 }
 0x558   : > { %v1167_v14 = vmul.f32 %v1511_v7, %v1166_v9 }
 0x560   : > { %v1513_v11 = vpop.eup %1512 }
 0x561   : > { %v1164_v13 = vmul.f32 0.6931472, %v1513_v11 }
 0x563   : > { %v1170_v16 = vsel %vm1169_vm5, %v1167_v14, %v1164_v13 }
 0x564   : > { %v1172_v18 = vadd.f32 %v1170_v16, %v1144_v15 }
 0x566   : > { %v1176_v19 = vmul.f32 0.9, %v1172_v18 }
 0x568   : > { %v1178_v21 = vadd.f32 0.1, %v1176_v19 }
 0x56a   : > { %v1183_v22 = vcombine.low %v1134_v20, %v1178_v21 }
 0x56c   : > { %1312 = vst.sshfl [vmem:[%s440_s22] sm:$0x33 pattern:$0x76325410] %v1183_v22 }
 0x56d PF: > { %s23_s25 = sadd.s32 1, %s1520_s25  }
 0x56e   : > { %p20_p4 = scmp.ge.s32.totalorder %s23_s25, 4  }
 0x570   :  { %22 = sbr.rel (!%p20_p4) target bundleno = 1 (0x1), region = 102 }

</bundles_post_ra>
